<compile_context>
chip_gen: v7x
topology: tpu7x:2x2x1
jax: 0.10.0
libtpu: 0.0.40
codegen_flags: <defaults>
</compile_context>

<pallas_src>
import jax
import jax.numpy as jnp
from jax import lax
from jax.experimental import pallas as pl
from jax.experimental.pallas import tpu as pltpu


def _make_dice_kernel(*, n_classes, row_tile, nbs, full_blocks, total_blocks,
                      n_valid, apply_softmax, has_mask):
    C = n_classes
    R = row_tile
    needs_tail = full_blocks < total_blocks

    def kernel(*refs):
        if has_mask:
            x_ref, lab_ref, m_ref, o_ref = refs
        else:
            x_ref, lab_ref, o_ref = refs
            m_ref = None

        s_id = pl.program_id(1)
        n = pl.program_id(2)
        g = s_id * nbs + n                       # global row-block index

        @pl.when(n == 0)
        def _():
            o_ref[...] = jnp.zeros_like(o_ref)

        def accumulate(tail):
            x = x_ref[0].astype(jnp.float32)     # (C, R, 128) logits / scores

            valid = None
            if tail:
                row = lax.broadcasted_iota(jnp.int32, (R, 128), 0)
                lane = lax.broadcasted_iota(jnp.int32, (R, 128), 1)
                pix = (g * R + row) * 128 + lane
                valid = pix < n_valid            # (R, 128)
                # The padded / out-of-bounds tail holds unspecified VMEM;
                # sanitize so NaN/Inf garbage cannot leak through softmax.
                x = jnp.where(valid[None], x, 0.0)

            if apply_softmax:
                mx = jnp.max(x, axis=0, keepdims=True)   # C-way slab max (VPU)
                e = jnp.exp(x - mx)                      # EUP
                inv = pl.reciprocal(jnp.sum(e, axis=0, keepdims=True))
                s = e * inv                              # divide -> multiply
            else:
                s = x

            lab = lab_ref[0, 0].astype(jnp.int32)        # (R, 128) labels

            if has_mask:
                m0 = m_ref[0, 0].astype(jnp.float32)     # (R, 128) shared mask
                if tail:
                    m0 = jnp.where(valid, m0, 0.0)
            elif tail:
                m0 = valid.astype(jnp.float32)
            else:
                m0 = None

            def acc_row(idx, p):
                # Fold rows -> (1, 128): vreg-tree VPU adds + one XLU reduce
                # (XLU slot is otherwise idle).  Lane reduce is deferred to
                # the wrapper so the store stays 128-lane dense.
                o_ref[0, 0, idx:idx + 1] += jnp.sum(p, axis=0, keepdims=True)

            for c in range(C):
                sc = s[c]                                    # (R, 128)
                tc = (lab == c).astype(jnp.float32)          # one-hot slab
                if m0 is None:
                    acc_row(0 * C + c, sc * tc)              # intersect
                    acc_row(1 * C + c, tc)                   # y_sum (t*t == t)
                    acc_row(2 * C + c, sc * sc)              # z_sum
                else:
                    tm = tc * m0
                    acc_row(0 * C + c, sc * tm)
                    acc_row(1 * C + c, tm)
                    acc_row(2 * C + c, (sc * sc) * m0)

        if not needs_tail:
            accumulate(tail=False)
        else:
            if full_blocks > 0:
                @pl.when(g < full_blocks)
                def _():
                    accumulate(tail=False)       # mask-free interior blocks

            @pl.when(g >= full_blocks)
            def _():
                accumulate(tail=True)            # ragged / duplicated blocks

    return kernel


def dice_loss(inputs, target, n_classes, mask=None, weight=None, softmax=False,
              tile_pixels=65536, n_splits=2):
    """Matches DiceLoss(n_classes).forward(inputs, target, mask, weight, softmax)
    for integer-label targets of shape (B, H, W) or (B, 1, H, W)."""
    B, C, H, W = inputs.shape
    assert C == n_classes, "channel dim must equal n_classes"
    hw = H * W

    # TODO(synk): already-one-hot targets (B, C, H, W) and per-class masks
    # (mask.shape[1] == n_classes) are not supported; only integer labels and
    # a shared spatial mask (B, 1, H, W) / (B, H, W) are handled.

    # Pack pixels into dense (sublane=8, lane=128) tiles.  The reshape is a
    # free metadata view when hw is a multiple of 1024 (typical segmentation
    # sizes); otherwise a one-time pad copy is paid.
    hw_pad = -(-hw // 1024) * 1024
    x = inputs.reshape(B, C, hw)                       # native dtype
    lab = target.reshape(B, 1, hw)                     # native int dtype
    m = None if mask is None else mask.reshape(B, 1, hw)
    if hw_pad != hw:
        pad = ((0, 0), (0, 0), (0, hw_pad - hw))
        x = jnp.pad(x, pad)
        lab = jnp.pad(lab, pad)
        if m is not None:
            m = jnp.pad(m, pad)
    n_rows = hw_pad // 128                             # always a multiple of 8
    x = x.reshape(B, C, n_rows, 128)
    lab = lab.reshape(B, 1, n_rows, 128)
    if m is not None:
        m = m.reshape(B, 1, n_rows, 128)
    has_mask = m is not None

    # Tile sizing: biggest row tile that keeps double-buffered inputs plus
    # in-kernel f32 temporaries inside a conservative VMEM budget (v7x-safe).
    ix = jnp.dtype(x.dtype).itemsize
    il = jnp.dtype(lab.dtype).itemsize
    im = jnp.dtype(m.dtype).itemsize if has_mask else 0
    per_pixel = 2 * (C * ix + il + im) + 8 * C * 4     # dbl-buf inputs + temps
    vmem_budget = 20 * 1024 * 1024
    max_pixels = max(1024, (vmem_budget // per_pixel) // 1024 * 1024)
    pix = max(1024, min(int(tile_pixels), int(max_pixels)))
    row_tile = (pix // 1024) * 8                       # rows, multiple of 8
    if n_rows <= row_tile:
        row_tile = n_rows
        nb = 1
    else:
        nb = -(-n_rows // row_tile)

    # Split the pixel-block axis so both TensorCores stay busy even when the
    # batch is small / odd (v7x megacore).  Duplicate trailing blocks are
    # clamped in the index maps and fully masked inside the kernel.
    S = max(1, min(int(n_splits), nb))
    nbs = -(-nb // S)
    total_blocks = S * nbs
    block_pixels = row_tile * 128
    full_blocks = hw // block_pixels                   # blocks fully in-image

    kern = _make_dice_kernel(
        n_classes=C, row_tile=row_tile, nbs=nbs, full_blocks=full_blocks,
        total_blocks=total_blocks, n_valid=hw, apply_softmax=softmax,
        has_mask=has_mask)

    def row_block(s, n):
        g = s * nbs + n
        if total_blocks > nb:                          # clamp duplicated tail
            g = jnp.minimum(g, nb - 1)
        return g

    in_specs = [
        pl.BlockSpec((1, C, row_tile, 128),
                     lambda b, s, n: (b, 0, row_block(s, n), 0)),
        pl.BlockSpec((1, 1, row_tile, 128),
                     lambda b, s, n: (b, 0, row_block(s, n), 0)),
    ]
    args = [x, lab]
    if has_mask:
        in_specs.append(pl.BlockSpec((1, 1, row_tile, 128),
                                     lambda b, s, n: (b, 0, row_block(s, n), 0)))
        args.append(m)

    # One packed, lane-dense partial-sum buffer per (batch, split):
    # rows 0..C-1 = intersect, C..2C-1 = y_sum, 2C..3C-1 = z_sum.
    out_shape = jax.ShapeDtypeStruct((B, S, 3 * C, 128), jnp.float32)
    out_specs = pl.BlockSpec((1, 1, 3 * C, 128),
                             lambda b, s, n: (b, s, 0, 0))

    out = pl.pallas_call(
        kern,
        out_shape=out_shape,
        grid_spec=pltpu.PrefetchScalarGridSpec(
            num_scalar_prefetch=0,
            grid=(B, S, nbs),
            in_specs=in_specs,
            out_specs=out_specs,
        ),
        compiler_params=pltpu.CompilerParams(
            dimension_semantics=("parallel", "parallel", "arbitrary"),
            vmem_limit_bytes=32 * 1024 * 1024),
    )(*args)

    sums = jnp.sum(out, axis=(0, 1, 3)).reshape(3, C)  # (3, C)
    inter, ysum, zsum = sums[0], sums[1], sums[2]

    smooth = 1e-10
    dice = 1.0 - (2.0 * inter + smooth) / (zsum + ysum + smooth)  # per-class

    if weight is None:
        w = jnp.ones((n_classes,), jnp.float32)
    else:
        w = jnp.asarray(weight, jnp.float32)
    return jnp.sum(dice * w) / n_classes


def _dice_loss_ref(inputs, target, n_classes, mask=None, weight=None,
                   softmax=False):
    """Pure-JAX reference mirroring the PyTorch module."""
    s = jax.nn.softmax(inputs, axis=1) if softmax else inputs
    t = jax.nn.one_hot(target, n_classes, axis=1, dtype=jnp.float32)
    if weight is None:
        weight = [1.0] * n_classes
    smooth = 1e-10
    loss = 0.0
    for i in range(n_classes):
        si, ti = s[:, i], t[:, i]
        if mask is None:
            inter = jnp.sum(si * ti)
            ys = jnp.sum(ti * ti)
            zs = jnp.sum(si * si)
        else:
            mi = mask.reshape(si.shape).astype(jnp.float32)
            inter = jnp.sum(si * ti * mi)
            ys = jnp.sum(ti * ti * mi)
            zs = jnp.sum(si * si * mi)
        loss += (1.0 - (2.0 * inter + smooth) / (zs + ys + smooth)) * weight[i]
    return loss / n_classes


if __name__ == "__main__":
    n_classes = 4
    B, H, W = 2, 16, 16

    key = jax.random.PRNGKey(0)
    k1, k2, k3, k4 = jax.random.split(key, 4)
    logits = jax.random.normal(k1, (B, n_classes, H, W), dtype=jnp.float32)
    target = jax.random.randint(k2, (B, H, W), 0, n_classes, dtype=jnp.int32)

    # 1) Default path: single (padded) pixel block per batch element.
    loss = jax.block_until_ready(dice_loss(logits, target, n_classes, softmax=True))
    ref = jax.block_until_ready(_dice_loss_ref(logits, target, n_classes, softmax=True))
    assert jnp.allclose(loss, ref, atol=1e-5, rtol=1e-5), (loss, ref)

    # 2) Multi-block reduction + 2-way core-split path (small tile forces it).
    H2 = W2 = 64
    logits2 = jax.random.normal(k3, (B, n_classes, H2, W2), dtype=jnp.float32)
    target2 = jax.random.randint(k4, (B, H2, W2), 0, n_classes, dtype=jnp.int32)
    loss2 = jax.block_until_ready(
        dice_loss(logits2, target2, n_classes, softmax=True, tile_pixels=1024))
    ref2 = jax.block_until_ready(
        _dice_loss_ref(logits2, target2, n_classes, softmax=True))
    assert jnp.allclose(loss2, ref2, atol=1e-5, rtol=1e-5), (loss2, ref2)

    # 3) Ragged tail + clamped duplicate split block + spatial mask + weights.
    H3 = W3 = 50
    logits3 = jax.random.normal(k1, (B, n_classes, H3, W3), dtype=jnp.float32)
    target3 = jax.random.randint(k2, (B, H3, W3), 0, n_classes, dtype=jnp.int32)
    mask3 = (jax.random.uniform(k3, (B, 1, H3, W3)) > 0.3).astype(jnp.float32)
    wts = [1.0, 2.0, 0.5, 1.5]
    loss3 = jax.block_until_ready(
        dice_loss(logits3, target3, n_classes, mask=mask3, weight=wts,
                  softmax=True, tile_pixels=1024))
    ref3 = jax.block_until_ready(
        _dice_loss_ref(logits3, target3, n_classes, mask=mask3, weight=wts,
                       softmax=True))
    assert jnp.allclose(loss3, ref3, atol=1e-5, rtol=1e-5), (loss3, ref3)

    print("KERNEL_OK")
</pallas_src>

<mosaic_0001>
module attributes {stable_mosaic.version = 11 : i64} {
  func.func @kernel(%arg0: i32, %arg1: i32, %arg2: i32, %arg3: memref<1x4x8x128xf32, #tpu.memory_space<vmem>>, %arg4: memref<1x1x8x128xi32, #tpu.memory_space<vmem>>, %arg5: memref<1x1x12x128xf32, #tpu.memory_space<vmem>>) attributes {dimension_semantics = [#tpu.dimension_semantics<parallel>, #tpu.dimension_semantics<parallel>, #tpu.dimension_semantics<arbitrary>], iteration_bounds = array<i64: 2, 1, 1>, scalar_prefetch = 0 : i64, scratch_operands = 0 : i64, tpu.core_type = #tpu.core_type<tc>, window_params = [{transform_indices = @transform_0, window_bounds = array<i64: 1, 4, 8, 128>}, {transform_indices = @transform_1, window_bounds = array<i64: 1, 1, 8, 128>}, {transform_indices = @transform_2, window_bounds = array<i64: 1, 1, 12, 128>}]} {
    %c1_i32 = arith.constant 1 : i32
    %0 = arith.muli %arg1, %c1_i32 : i32
    %1 = arith.addi %0, %arg2 : i32
    %c0_i32 = arith.constant 0 : i32
    %2 = arith.cmpi eq, %arg2, %c0_i32 : i32
    %3 = arith.extui %2 : i1 to i32
    %c0_i32_0 = arith.constant 0 : i32
    %4 = arith.cmpi ne, %3, %c0_i32_0 : i32
    scf.if %4 {
      %cst = arith.constant 0.000000e+00 : f32
      %8 = vector.broadcast %cst : f32 to vector<1x1x12x128xf32>
      %c0 = arith.constant 0 : index
      %c0_3 = arith.constant 0 : index
      %c0_4 = arith.constant 0 : index
      %c0_5 = arith.constant 0 : index
      %9 = vector.load %arg5[%c0, %c0_3, %c0_4, %c0_5] : memref<1x1x12x128xf32, #tpu.memory_space<vmem>>, vector<1x1x12x128xf32>
      tpu.vector_store %arg5[%c0, %c0_3, %c0_4, %c0_5], %8 {strides = array<i32>} : memref<1x1x12x128xf32, #tpu.memory_space<vmem>>, vector<1x1x12x128xf32>,
    } else {
    }
    %c0_i32_1 = arith.constant 0 : i32
    %5 = arith.cmpi sge, %1, %c0_i32_1 : i32
    %6 = arith.extui %5 : i1 to i32
    %c0_i32_2 = arith.constant 0 : i32
    %7 = arith.cmpi ne, %6, %c0_i32_2 : i32
    scf.if %7 {
      %c0 = arith.constant 0 : index
      %c0_3 = arith.constant 0 : index
      %c0_4 = arith.constant 0 : index
      %c0_5 = arith.constant 0 : index
      %8 = vector.load %arg3[%c0, %c0_3, %c0_4, %c0_5] : memref<1x4x8x128xf32, #tpu.memory_space<vmem>>, vector<1x4x8x128xf32>
      %9 = vector.shape_cast %8 : vector<1x4x8x128xf32> to vector<4x8x128xf32>
      %10 = tpu.iota {dimensions = array<i32: 0>} : vector<8x128xi32>
      %11 = tpu.iota {dimensions = array<i32: 1>} : vector<8x128xi32>
      %c8_i32 = arith.constant 8 : i32
      %12 = arith.muli %1, %c8_i32 : i32
      %13 = vector.broadcast %12 : i32 to vector<8x128xi32>
      %14 = arith.addi %13, %10 : vector<8x128xi32>
      %c128_i32 = arith.constant 128 : i32
      %15 = vector.broadcast %c128_i32 : i32 to vector<8x128xi32>
      %16 = arith.muli %14, %15 : vector<8x128xi32>
      %17 = arith.addi %16, %11 : vector<8x128xi32>
      %c256_i32 = arith.constant 256 : i32
      %18 = vector.broadcast %c256_i32 : i32 to vector<8x128xi32>
      %19 = arith.cmpi slt, %17, %18 : vector<8x128xi32>
      %20 = vector.shape_cast %19 : vector<8x128xi1> to vector<1x8x128xi1>
      %cst = arith.constant 0.000000e+00 : f32
      %21 = vector.shape_cast %20 : vector<1x8x128xi1> to vector<1x8x128xi1>
      %22 = vector.broadcast %21 : vector<1x8x128xi1> to vector<4x8x128xi1>
      %23 = vector.broadcast %cst : f32 to vector<4x8x128xf32>
      %24 = arith.select %22, %9, %23 : vector<4x8x128xi1>, vector<4x8x128xf32>
      %cst_6 = arith.constant dense<0xFF800000> : vector<8x128xf32>
      %25 = vector.multi_reduction <maximumf>, %24, %cst_6 [0] : vector<4x8x128xf32> to vector<8x128xf32>
      %26 = vector.shape_cast %25 : vector<8x128xf32> to vector<1x8x128xf32>
      %27 = vector.broadcast %26 : vector<1x8x128xf32> to vector<4x8x128xf32>
      %28 = arith.subf %24, %27 : vector<4x8x128xf32>
      %29 = math.exp %28 : vector<4x8x128xf32>
      %cst_7 = arith.constant dense<0.000000e+00> : vector<8x128xf32>
      %30 = vector.multi_reduction <add>, %29, %cst_7 [0] : vector<4x8x128xf32> to vector<8x128xf32>
      %31 = vector.shape_cast %30 : vector<8x128xf32> to vector<1x8x128xf32>
      %32 = tpu.reciprocal %31 : vector<1x8x128xf32> -> vector<1x8x128xf32>
      %33 = vector.broadcast %32 : vector<1x8x128xf32> to vector<4x8x128xf32>
      %34 = arith.mulf %29, %33 : vector<4x8x128xf32>
      %c0_8 = arith.constant 0 : index
      %c0_9 = arith.constant 0 : index
      %c0_10 = arith.constant 0 : index
      %c0_11 = arith.constant 0 : index
      %35 = vector.load %arg4[%c0_8, %c0_9, %c0_10, %c0_11] : memref<1x1x8x128xi32, #tpu.memory_space<vmem>>, vector<1x1x8x128xi32>
      %36 = vector.shape_cast %35 : vector<1x1x8x128xi32> to vector<8x128xi32>
      %37 = arith.extui %19 : vector<8x128xi1> to vector<8x128xi32>
      %38 = arith.sitofp %37 : vector<8x128xi32> to vector<8x128xf32>
      %39 = vector.extract_strided_slice %34 {offsets = [0, 0, 0], sizes = [1, 8, 128], strides = [1, 1, 1]} : vector<4x8x128xf32> to vector<1x8x128xf32>
      %40 = vector.shape_cast %39 : vector<1x8x128xf32> to vector<8x128xf32>
      %c0_i32_12 = arith.constant 0 : i32
      %41 = vector.broadcast %c0_i32_12 : i32 to vector<8x128xi32>
      %42 = arith.cmpi eq, %36, %41 : vector<8x128xi32>
      %43 = arith.extui %42 : vector<8x128xi1> to vector<8x128xi32>
      %44 = arith.sitofp %43 : vector<8x128xi32> to vector<8x128xf32>
      %45 = arith.mulf %44, %38 : vector<8x128xf32>
      %46 = arith.mulf %40, %45 : vector<8x128xf32>
      %c0_13 = arith.constant 0 : index
      %c0_14 = arith.constant 0 : index
      %c0_15 = arith.constant 0 : index
      %c0_16 = arith.constant 0 : index
      %47 = vector.load %arg5[%c0_13, %c0_14, %c0_15, %c0_16] : memref<1x1x12x128xf32, #tpu.memory_space<vmem>>, vector<1x1x1x128xf32>
      %48 = vector.shape_cast %47 : vector<1x1x1x128xf32> to vector<1x128xf32>
      %cst_17 = arith.constant dense<0.000000e+00> : vector<128xf32>
      %49 = vector.multi_reduction <add>, %46, %cst_17 [0] : vector<8x128xf32> to vector<128xf32>
      %50 = vector.shape_cast %49 : vector<128xf32> to vector<1x128xf32>
      %51 = arith.addf %48, %50 : vector<1x128xf32>
      %c0_18 = arith.constant 0 : index
      %c0_19 = arith.constant 0 : index
      %c0_20 = arith.constant 0 : index
      %c0_21 = arith.constant 0 : index
      %52 = vector.load %arg5[%c0_18, %c0_19, %c0_20, %c0_21] : memref<1x1x12x128xf32, #tpu.memory_space<vmem>>, vector<1x1x1x128xf32>
      %53 = vector.shape_cast %52 : vector<1x1x1x128xf32> to vector<1x128xf32>
      %54 = vector.shape_cast %51 : vector<1x128xf32> to vector<1x1x1x128xf32>
      tpu.vector_store %arg5[%c0_18, %c0_19, %c0_20, %c0_21], %54 {strides = array<i32>} : memref<1x1x12x128xf32, #tpu.memory_space<vmem>>, vector<1x1x1x128xf32>,
      %c0_22 = arith.constant 0 : index
      %c0_23 = arith.constant 0 : index
      %c4 = arith.constant 4 : index
      %c0_24 = arith.constant 0 : index
      %55 = vector.load %arg5[%c0_22, %c0_23, %c4, %c0_24] : memref<1x1x12x128xf32, #tpu.memory_space<vmem>>, vector<1x1x1x128xf32>
      %56 = vector.shape_cast %55 : vector<1x1x1x128xf32> to vector<1x128xf32>
      %cst_25 = arith.constant dense<0.000000e+00> : vector<128xf32>
      %57 = vector.multi_reduction <add>, %45, %cst_25 [0] : vector<8x128xf32> to vector<128xf32>
      %58 = vector.shape_cast %57 : vector<128xf32> to vector<1x128xf32>
      %59 = arith.addf %56, %58 : vector<1x128xf32>
      %c0_26 = arith.constant 0 : index
      %c0_27 = arith.constant 0 : index
      %c4_28 = arith.constant 4 : index
      %c0_29 = arith.constant 0 : index
      %60 = vector.load %arg5[%c0_26, %c0_27, %c4_28, %c0_29] : memref<1x1x12x128xf32, #tpu.memory_space<vmem>>, vector<1x1x1x128xf32>
      %61 = vector.shape_cast %60 : vector<1x1x1x128xf32> to vector<1x128xf32>
      %62 = vector.shape_cast %59 : vector<1x128xf32> to vector<1x1x1x128xf32>
      tpu.vector_store %arg5[%c0_26, %c0_27, %c4_28, %c0_29], %62 {strides = array<i32>} : memref<1x1x12x128xf32, #tpu.memory_space<vmem>>, vector<1x1x1x128xf32>,
      %63 = arith.mulf %40, %40 : vector<8x128xf32>
      %64 = arith.mulf %63, %38 : vector<8x128xf32>
      %c0_30 = arith.constant 0 : index
      %c0_31 = arith.constant 0 : index
      %c8 = arith.constant 8 : index
      %c0_32 = arith.constant 0 : index
      %65 = vector.load %arg5[%c0_30, %c0_31, %c8, %c0_32] : memref<1x1x12x128xf32, #tpu.memory_space<vmem>>, vector<1x1x1x128xf32>
      %66 = vector.shape_cast %65 : vector<1x1x1x128xf32> to vector<1x128xf32>
      %cst_33 = arith.constant dense<0.000000e+00> : vector<128xf32>
      %67 = vector.multi_reduction <add>, %64, %cst_33 [0] : vector<8x128xf32> to vector<128xf32>
      %68 = vector.shape_cast %67 : vector<128xf32> to vector<1x128xf32>
      %69 = arith.addf %66, %68 : vector<1x128xf32>
      %c0_34 = arith.constant 0 : index
      %c0_35 = arith.constant 0 : index
      %c8_36 = arith.constant 8 : index
      %c0_37 = arith.constant 0 : index
      %70 = vector.load %arg5[%c0_34, %c0_35, %c8_36, %c0_37] : memref<1x1x12x128xf32, #tpu.memory_space<vmem>>, vector<1x1x1x128xf32>
      %71 = vector.shape_cast %70 : vector<1x1x1x128xf32> to vector<1x128xf32>
      %72 = vector.shape_cast %69 : vector<1x128xf32> to vector<1x1x1x128xf32>
      tpu.vector_store %arg5[%c0_34, %c0_35, %c8_36, %c0_37], %72 {strides = array<i32>} : memref<1x1x12x128xf32, #tpu.memory_space<vmem>>, vector<1x1x1x128xf32>,
      %73 = vector.extract_strided_slice %34 {offsets = [1, 0, 0], sizes = [1, 8, 128], strides = [1, 1, 1]} : vector<4x8x128xf32> to vector<1x8x128xf32>
      %74 = vector.shape_cast %73 : vector<1x8x128xf32> to vector<8x128xf32>
      %c1_i32_38 = arith.constant 1 : i32
      %75 = vector.broadcast %c1_i32_38 : i32 to vector<8x128xi32>
      %76 = arith.cmpi eq, %36, %75 : vector<8x128xi32>
      %77 = arith.extui %76 : vector<8x128xi1> to vector<8x128xi32>
      %78 = arith.sitofp %77 : vector<8x128xi32> to vector<8x128xf32>
      %79 = arith.mulf %78, %38 : vector<8x128xf32>
      %80 = arith.mulf %74, %79 : vector<8x128xf32>
      %c0_39 = arith.constant 0 : index
      %c0_40 = arith.constant 0 : index
      %c1 = arith.constant 1 : index
      %c0_41 = arith.constant 0 : index
      %81 = vector.load %arg5[%c0_39, %c0_40, %c1, %c0_41] : memref<1x1x12x128xf32, #tpu.memory_space<vmem>>, vector<1x1x1x128xf32>
      %82 = vector.shape_cast %81 : vector<1x1x1x128xf32> to vector<1x128xf32>
      %cst_42 = arith.constant dense<0.000000e+00> : vector<128xf32>
      %83 = vector.multi_reduction <add>, %80, %cst_42 [0] : vector<8x128xf32> to vector<128xf32>
      %84 = vector.shape_cast %83 : vector<128xf32> to vector<1x128xf32>
      %85 = arith.addf %82, %84 : vector<1x128xf32>
      %c0_43 = arith.constant 0 : index
      %c0_44 = arith.constant 0 : index
      %c1_45 = arith.constant 1 : index
      %c0_46 = arith.constant 0 : index
      %86 = vector.load %arg5[%c0_43, %c0_44, %c1_45, %c0_46] : memref<1x1x12x128xf32, #tpu.memory_space<vmem>>, vector<1x1x1x128xf32>
      %87 = vector.shape_cast %86 : vector<1x1x1x128xf32> to vector<1x128xf32>
      %88 = vector.shape_cast %85 : vector<1x128xf32> to vector<1x1x1x128xf32>
      tpu.vector_store %arg5[%c0_43, %c0_44, %c1_45, %c0_46], %88 {strides = array<i32>} : memref<1x1x12x128xf32, #tpu.memory_space<vmem>>, vector<1x1x1x128xf32>,
      %c0_47 = arith.constant 0 : index
      %c0_48 = arith.constant 0 : index
      %c5 = arith.constant 5 : index
      %c0_49 = arith.constant 0 : index
      %89 = vector.load %arg5[%c0_47, %c0_48, %c5, %c0_49] : memref<1x1x12x128xf32, #tpu.memory_space<vmem>>, vector<1x1x1x128xf32>
      %90 = vector.shape_cast %89 : vector<1x1x1x128xf32> to vector<1x128xf32>
      %cst_50 = arith.constant dense<0.000000e+00> : vector<128xf32>
      %91 = vector.multi_reduction <add>, %79, %cst_50 [0] : vector<8x128xf32> to vector<128xf32>
      %92 = vector.shape_cast %91 : vector<128xf32> to vector<1x128xf32>
      %93 = arith.addf %90, %92 : vector<1x128xf32>
      %c0_51 = arith.constant 0 : index
      %c0_52 = arith.constant 0 : index
      %c5_53 = arith.constant 5 : index
      %c0_54 = arith.constant 0 : index
      %94 = vector.load %arg5[%c0_51, %c0_52, %c5_53, %c0_54] : memref<1x1x12x128xf32, #tpu.memory_space<vmem>>, vector<1x1x1x128xf32>
      %95 = vector.shape_cast %94 : vector<1x1x1x128xf32> to vector<1x128xf32>
      %96 = vector.shape_cast %93 : vector<1x128xf32> to vector<1x1x1x128xf32>
      tpu.vector_store %arg5[%c0_51, %c0_52, %c5_53, %c0_54], %96 {strides = array<i32>} : memref<1x1x12x128xf32, #tpu.memory_space<vmem>>, vector<1x1x1x128xf32>,
      %97 = arith.mulf %74, %74 : vector<8x128xf32>
      %98 = arith.mulf %97, %38 : vector<8x128xf32>
      %c0_55 = arith.constant 0 : index
      %c0_56 = arith.constant 0 : index
      %c9 = arith.constant 9 : index
      %c0_57 = arith.constant 0 : index
      %99 = vector.load %arg5[%c0_55, %c0_56, %c9, %c0_57] : memref<1x1x12x128xf32, #tpu.memory_space<vmem>>, vector<1x1x1x128xf32>
      %100 = vector.shape_cast %99 : vector<1x1x1x128xf32> to vector<1x128xf32>
      %cst_58 = arith.constant dense<0.000000e+00> : vector<128xf32>
      %101 = vector.multi_reduction <add>, %98, %cst_58 [0] : vector<8x128xf32> to vector<128xf32>
      %102 = vector.shape_cast %101 : vector<128xf32> to vector<1x128xf32>
      %103 = arith.addf %100, %102 : vector<1x128xf32>
      %c0_59 = arith.constant 0 : index
      %c0_60 = arith.constant 0 : index
      %c9_61 = arith.constant 9 : index
      %c0_62 = arith.constant 0 : index
      %104 = vector.load %arg5[%c0_59, %c0_60, %c9_61, %c0_62] : memref<1x1x12x128xf32, #tpu.memory_space<vmem>>, vector<1x1x1x128xf32>
      %105 = vector.shape_cast %104 : vector<1x1x1x128xf32> to vector<1x128xf32>
      %106 = vector.shape_cast %103 : vector<1x128xf32> to vector<1x1x1x128xf32>
      tpu.vector_store %arg5[%c0_59, %c0_60, %c9_61, %c0_62], %106 {strides = array<i32>} : memref<1x1x12x128xf32, #tpu.memory_space<vmem>>, vector<1x1x1x128xf32>,
      %107 = vector.extract_strided_slice %34 {offsets = [2, 0, 0], sizes = [1, 8, 128], strides = [1, 1, 1]} : vector<4x8x128xf32> to vector<1x8x128xf32>
      %108 = vector.shape_cast %107 : vector<1x8x128xf32> to vector<8x128xf32>
      %c2_i32 = arith.constant 2 : i32
      %109 = vector.broadcast %c2_i32 : i32 to vector<8x128xi32>
      %110 = arith.cmpi eq, %36, %109 : vector<8x128xi32>
      %111 = arith.extui %110 : vector<8x128xi1> to vector<8x128xi32>
      %112 = arith.sitofp %111 : vector<8x128xi32> to vector<8x128xf32>
      %113 = arith.mulf %112, %38 : vector<8x128xf32>
      %114 = arith.mulf %108, %113 : vector<8x128xf32>
      %c0_63 = arith.constant 0 : index
      %c0_64 = arith.constant 0 : index
      %c2 = arith.constant 2 : index
      %c0_65 = arith.constant 0 : index
      %115 = vector.load %arg5[%c0_63, %c0_64, %c2, %c0_65] : memref<1x1x12x128xf32, #tpu.memory_space<vmem>>, vector<1x1x1x128xf32>
      %116 = vector.shape_cast %115 : vector<1x1x1x128xf32> to vector<1x128xf32>
      %cst_66 = arith.constant dense<0.000000e+00> : vector<128xf32>
      %117 = vector.multi_reduction <add>, %114, %cst_66 [0] : vector<8x128xf32> to vector<128xf32>
      %118 = vector.shape_cast %117 : vector<128xf32> to vector<1x128xf32>
      %119 = arith.addf %116, %118 : vector<1x128xf32>
      %c0_67 = arith.constant 0 : index
      %c0_68 = arith.constant 0 : index
      %c2_69 = arith.constant 2 : index
      %c0_70 = arith.constant 0 : index
      %120 = vector.load %arg5[%c0_67, %c0_68, %c2_69, %c0_70] : memref<1x1x12x128xf32, #tpu.memory_space<vmem>>, vector<1x1x1x128xf32>
      %121 = vector.shape_cast %120 : vector<1x1x1x128xf32> to vector<1x128xf32>
      %122 = vector.shape_cast %119 : vector<1x128xf32> to vector<1x1x1x128xf32>
      tpu.vector_store %arg5[%c0_67, %c0_68, %c2_69, %c0_70], %122 {strides = array<i32>} : memref<1x1x12x128xf32, #tpu.memory_space<vmem>>, vector<1x1x1x128xf32>,
      %c0_71 = arith.constant 0 : index
      %c0_72 = arith.constant 0 : index
      %c6 = arith.constant 6 : index
      %c0_73 = arith.constant 0 : index
      %123 = vector.load %arg5[%c0_71, %c0_72, %c6, %c0_73] : memref<1x1x12x128xf32, #tpu.memory_space<vmem>>, vector<1x1x1x128xf32>
      %124 = vector.shape_cast %123 : vector<1x1x1x128xf32> to vector<1x128xf32>
      %cst_74 = arith.constant dense<0.000000e+00> : vector<128xf32>
      %125 = vector.multi_reduction <add>, %113, %cst_74 [0] : vector<8x128xf32> to vector<128xf32>
      %126 = vector.shape_cast %125 : vector<128xf32> to vector<1x128xf32>
      %127 = arith.addf %124, %126 : vector<1x128xf32>
      %c0_75 = arith.constant 0 : index
      %c0_76 = arith.constant 0 : index
      %c6_77 = arith.constant 6 : index
      %c0_78 = arith.constant 0 : index
      %128 = vector.load %arg5[%c0_75, %c0_76, %c6_77, %c0_78] : memref<1x1x12x128xf32, #tpu.memory_space<vmem>>, vector<1x1x1x128xf32>
      %129 = vector.shape_cast %128 : vector<1x1x1x128xf32> to vector<1x128xf32>
      %130 = vector.shape_cast %127 : vector<1x128xf32> to vector<1x1x1x128xf32>
      tpu.vector_store %arg5[%c0_75, %c0_76, %c6_77, %c0_78], %130 {strides = array<i32>} : memref<1x1x12x128xf32, #tpu.memory_space<vmem>>, vector<1x1x1x128xf32>,
      %131 = arith.mulf %108, %108 : vector<8x128xf32>
      %132 = arith.mulf %131, %38 : vector<8x128xf32>
      %c0_79 = arith.constant 0 : index
      %c0_80 = arith.constant 0 : index
      %c10 = arith.constant 10 : index
      %c0_81 = arith.constant 0 : index
      %133 = vector.load %arg5[%c0_79, %c0_80, %c10, %c0_81] : memref<1x1x12x128xf32, #tpu.memory_space<vmem>>, vector<1x1x1x128xf32>
      %134 = vector.shape_cast %133 : vector<1x1x1x128xf32> to vector<1x128xf32>
      %cst_82 = arith.constant dense<0.000000e+00> : vector<128xf32>
      %135 = vector.multi_reduction <add>, %132, %cst_82 [0] : vector<8x128xf32> to vector<128xf32>
      %136 = vector.shape_cast %135 : vector<128xf32> to vector<1x128xf32>
      %137 = arith.addf %134, %136 : vector<1x128xf32>
      %c0_83 = arith.constant 0 : index
      %c0_84 = arith.constant 0 : index
      %c10_85 = arith.constant 10 : index
      %c0_86 = arith.constant 0 : index
      %138 = vector.load %arg5[%c0_83, %c0_84, %c10_85, %c0_86] : memref<1x1x12x128xf32, #tpu.memory_space<vmem>>, vector<1x1x1x128xf32>
      %139 = vector.shape_cast %138 : vector<1x1x1x128xf32> to vector<1x128xf32>
      %140 = vector.shape_cast %137 : vector<1x128xf32> to vector<1x1x1x128xf32>
      tpu.vector_store %arg5[%c0_83, %c0_84, %c10_85, %c0_86], %140 {strides = array<i32>} : memref<1x1x12x128xf32, #tpu.memory_space<vmem>>, vector<1x1x1x128xf32>,
      %141 = vector.extract_strided_slice %34 {offsets = [3, 0, 0], sizes = [1, 8, 128], strides = [1, 1, 1]} : vector<4x8x128xf32> to vector<1x8x128xf32>
      %142 = vector.shape_cast %141 : vector<1x8x128xf32> to vector<8x128xf32>
      %c3_i32 = arith.constant 3 : i32
      %143 = vector.broadcast %c3_i32 : i32 to vector<8x128xi32>
      %144 = arith.cmpi eq, %36, %143 : vector<8x128xi32>
      %145 = arith.extui %144 : vector<8x128xi1> to vector<8x128xi32>
      %146 = arith.sitofp %145 : vector<8x128xi32> to vector<8x128xf32>
      %147 = arith.mulf %146, %38 : vector<8x128xf32>
      %148 = arith.mulf %142, %147 : vector<8x128xf32>
      %c0_87 = arith.constant 0 : index
      %c0_88 = arith.constant 0 : index
      %c3 = arith.constant 3 : index
      %c0_89 = arith.constant 0 : index
      %149 = vector.load %arg5[%c0_87, %c0_88, %c3, %c0_89] : memref<1x1x12x128xf32, #tpu.memory_space<vmem>>, vector<1x1x1x128xf32>
      %150 = vector.shape_cast %149 : vector<1x1x1x128xf32> to vector<1x128xf32>
      %cst_90 = arith.constant dense<0.000000e+00> : vector<128xf32>
      %151 = vector.multi_reduction <add>, %148, %cst_90 [0] : vector<8x128xf32> to vector<128xf32>
      %152 = vector.shape_cast %151 : vector<128xf32> to vector<1x128xf32>
      %153 = arith.addf %150, %152 : vector<1x128xf32>
      %c0_91 = arith.constant 0 : index
      %c0_92 = arith.constant 0 : index
      %c3_93 = arith.constant 3 : index
      %c0_94 = arith.constant 0 : index
      %154 = vector.load %arg5[%c0_91, %c0_92, %c3_93, %c0_94] : memref<1x1x12x128xf32, #tpu.memory_space<vmem>>, vector<1x1x1x128xf32>
      %155 = vector.shape_cast %154 : vector<1x1x1x128xf32> to vector<1x128xf32>
      %156 = vector.shape_cast %153 : vector<1x128xf32> to vector<1x1x1x128xf32>
      tpu.vector_store %arg5[%c0_91, %c0_92, %c3_93, %c0_94], %156 {strides = array<i32>} : memref<1x1x12x128xf32, #tpu.memory_space<vmem>>, vector<1x1x1x128xf32>,
      %c0_95 = arith.constant 0 : index
      %c0_96 = arith.constant 0 : index
      %c7 = arith.constant 7 : index
      %c0_97 = arith.constant 0 : index
      %157 = vector.load %arg5[%c0_95, %c0_96, %c7, %c0_97] : memref<1x1x12x128xf32, #tpu.memory_space<vmem>>, vector<1x1x1x128xf32>
      %158 = vector.shape_cast %157 : vector<1x1x1x128xf32> to vector<1x128xf32>
      %cst_98 = arith.constant dense<0.000000e+00> : vector<128xf32>
      %159 = vector.multi_reduction <add>, %147, %cst_98 [0] : vector<8x128xf32> to vector<128xf32>
      %160 = vector.shape_cast %159 : vector<128xf32> to vector<1x128xf32>
      %161 = arith.addf %158, %160 : vector<1x128xf32>
      %c0_99 = arith.constant 0 : index
      %c0_100 = arith.constant 0 : index
      %c7_101 = arith.constant 7 : index
      %c0_102 = arith.constant 0 : index
      %162 = vector.load %arg5[%c0_99, %c0_100, %c7_101, %c0_102] : memref<1x1x12x128xf32, #tpu.memory_space<vmem>>, vector<1x1x1x128xf32>
      %163 = vector.shape_cast %162 : vector<1x1x1x128xf32> to vector<1x128xf32>
      %164 = vector.shape_cast %161 : vector<1x128xf32> to vector<1x1x1x128xf32>
      tpu.vector_store %arg5[%c0_99, %c0_100, %c7_101, %c0_102], %164 {strides = array<i32>} : memref<1x1x12x128xf32, #tpu.memory_space<vmem>>, vector<1x1x1x128xf32>,
      %165 = arith.mulf %142, %142 : vector<8x128xf32>
      %166 = arith.mulf %165, %38 : vector<8x128xf32>
      %c0_103 = arith.constant 0 : index
      %c0_104 = arith.constant 0 : index
      %c11 = arith.constant 11 : index
      %c0_105 = arith.constant 0 : index
      %167 = vector.load %arg5[%c0_103, %c0_104, %c11, %c0_105] : memref<1x1x12x128xf32, #tpu.memory_space<vmem>>, vector<1x1x1x128xf32>
      %168 = vector.shape_cast %167 : vector<1x1x1x128xf32> to vector<1x128xf32>
      %cst_106 = arith.constant dense<0.000000e+00> : vector<128xf32>
      %169 = vector.multi_reduction <add>, %166, %cst_106 [0] : vector<8x128xf32> to vector<128xf32>
      %170 = vector.shape_cast %169 : vector<128xf32> to vector<1x128xf32>
      %171 = arith.addf %168, %170 : vector<1x128xf32>
      %c0_107 = arith.constant 0 : index
      %c0_108 = arith.constant 0 : index
      %c11_109 = arith.constant 11 : index
      %c0_110 = arith.constant 0 : index
      %172 = vector.load %arg5[%c0_107, %c0_108, %c11_109, %c0_110] : memref<1x1x12x128xf32, #tpu.memory_space<vmem>>, vector<1x1x1x128xf32>
      %173 = vector.shape_cast %172 : vector<1x1x1x128xf32> to vector<1x128xf32>
      %174 = vector.shape_cast %171 : vector<1x128xf32> to vector<1x1x1x128xf32>
      tpu.vector_store %arg5[%c0_107, %c0_108, %c11_109, %c0_110], %174 {strides = array<i32>} : memref<1x1x12x128xf32, #tpu.memory_space<vmem>>, vector<1x1x1x128xf32>,
    } else {
    }
    return
  }
  func.func @transform_0(%arg0: i32, %arg1: i32, %arg2: i32) -> (i32, i32, i32, i32) {
    %c1_i32 = arith.constant 1 : i32
    %0 = arith.muli %arg1, %c1_i32 : i32
    %1 = arith.addi %0, %arg2 : i32
    %c0_i32 = arith.constant 0 : i32
    %c0_i32_0 = arith.constant 0 : i32
    %c0_i32_1 = arith.constant 0 : i32
    return %arg0, %c0_i32, %1, %c0_i32_0 : i32, i32, i32, i32
  }
  func.func @transform_1(%arg0: i32, %arg1: i32, %arg2: i32) -> (i32, i32, i32, i32) {
    %c1_i32 = arith.constant 1 : i32
    %0 = arith.muli %arg1, %c1_i32 : i32
    %1 = arith.addi %0, %arg2 : i32
    %c0_i32 = arith.constant 0 : i32
    %c0_i32_0 = arith.constant 0 : i32
    %c0_i32_1 = arith.constant 0 : i32
    return %arg0, %c0_i32, %1, %c0_i32_0 : i32, i32, i32, i32
  }
  func.func @transform_2(%arg0: i32, %arg1: i32, %arg2: i32) -> (i32, i32, i32, i32) {
    %c0_i32 = arith.constant 0 : i32
    %c0_i32_0 = arith.constant 0 : i32
    %c0_i32_1 = arith.constant 0 : i32
    return %arg0, %arg1, %c0_i32, %c0_i32_0 : i32, i32, i32, i32
  }
}

</mosaic_0001>

<bundles_post_ra>
// kernel: tpu_custom_call.1
= control target key start
LH: loop header
LB: loop body
LE: loop exit
PB: predicated region body
PF: predicated region fallthrough
CT: control target
= control target key end

     0   :  { %7 = vsyncpa [#allocation3], 0  ;;  %s1011_s0 = inlined_call_operand.hbm [shape: f32[2,4,8,128], index: 0, kind: input, shape index: {}]   ;;  %s1012_s1 = inlined_call_operand.hbm [shape: s32[2,1,8,128], index: 1, kind: input, shape index: {}]   ;;  %s1013_s2 = inlined_call_operand.vmem [shape: f32[2,1,12,128], index: 2, kind: output, shape index: {}]  }
   0x1   :  { %9 = vsyncpa [#allocation3 + $0x1], 0 }
   0x2   :  { %10 = vsyncpa [#allocation5], 0 }
   0x3   :  { %12 = vsyncpa [#allocation5 + $0x1], 0  ;;  %s794_s9 = smov 0   ;;  %s796_s10 = smov 0  }
   0x4   :  { %s798_s11 = smov 0   ;;  %s800_s12 = smov 0  }
   0x5   :  { %s802_s13 = smov 0   ;;  %s804_s14 = smov 0  }
   0x6 LB: > { %s562_s15 = sadd.s32 4294967295, %s772_s14   ;;  %s37_s16 = sadd.s32 1, %s768_s13  ;;  %s772_s14 = sphi %s804_s14, %s18_s14   ;;  %s768_s13 = sphi %s802_s13, %s1025_s13   ;;  %s764_s12 = sphi %s800_s12, %s1024_s12   ;;  %s760_s11 = sphi %s798_s11, %s1023_s11   ;;  %s756_s10 = sphi %s796_s10, %s1022_s10   ;;  %s752_s9 = sphi %s794_s9, %s1021_s9  }
   0x7   : > { %p39_p0 = scmp.ge.s32.totalorder %s37_s16, 2  ;;  %s48_s17 = sadd.s32 1, %s760_s11 }
   0x8   : > { %p55_p1 = scmp.ne.s32.totalorder %s760_s11, %s756_s10  ;;  %p56_p2 = scmp.eq.s32.totalorder %s772_s14, 0 }
   0x9   : > { %s1027_s16 = smov (%p39_p0, %s37_s16), 0  ;;  %p61_p4 = scmp.ne.s32.totalorder %s756_s10, %s752_s9 }
   0xa   : > { %p830_p3 = por %p56_p2, %p55_p1  ;;  %s43_s19 = ssub.s32 %s768_s13, %s1027_s16 }
   0xb   : > { %p62_p5 = scmp.eq.s32.totalorder %s562_s15, 0  ;;  %p46_p6 = scmp.eq.s32.totalorder %s43_s19, 0 }
   0xc   : > { %p596_p8 = scmp.lt.s32.totalorder %s772_s14, 2  ;;  %s846_s22 = sand.u32 1, %s760_s11  }
   0xd   : > { %p837_p7 = por %p62_p5, %p61_p4  ;;  %s583_s23 = sshll.u32 %s768_s13, 9 }
   0xe   : > { %s843_s21 = scalar_select %p46_p6, %s760_s11, %s48_s17  }
   0xf   : > { %s1016_s20 = scalar_select %p837_p7, 1, 0 }
  0x10   : > { %s566_s24 = sshll.u32 %s846_s22, 5  ;;  %s853_s27 = scalar_lea.hbm %s1011_s0, %s583_s23 }
  0x11   : > { %s147_s28 = scalar_lea.vmem [#allocation2], %s566_s24  ;;  %p857_p9 = pnand %p596_p8, %p830_p3 }
  0x12   : > { %s156_s29 = sshll.u32 %s147_s28, 4  ;;  %s144_s3 = scalar_lea.sflag [#allocation3], %s846_s22  ;;  %s861_s29 = int_to_ptr.vmem [resolvable:$true] %s156_s29 }
  0x13   : > { %s658_s4 = scalar_lea.hbm %s853_s27, 512  ;;  %p660_p11 = pneg %p857_p9 }
  0x14   : > { %p659_p10 = scmp.ne.s32.totalorder %s853_s27, %s658_s4  ;;  %s663_s7 = scalar_lea.hbm %s1011_s0, 1024 }
  0x15   : > { %p664_p0 = scmp.lt.u32.totalorder %s853_s27, %s1011_s0  ;;  %p665_p1 = scmp.lt.u32.totalorder %s663_s7, %s658_s4 }
  0x16   : > { %p661_p12 = pnand %p660_p11, %p659_p10  ;;  %p667_p3 = scmp.lt.u32.totalorder %s658_s4, %s853_s27 }
  0x17   : > { %p666_p2 = por %p665_p1, %p664_p0 }
  0x18   : > { %p662_p13 = pneg %p661_p12 }
  0x19   : > { %p668_p4 = por %p667_p3, %p666_p2 }
  0x1b   : > { %p669_p5 = pnand %p668_p4, %p662_p13 }
  0x1d   : > { %672 = shalt.err (!%p669_p5)
}
  0x1e   : > { %s673_s15 = scalar_lea.vmem %s861_s29, 512  ;;  %s774_s17 = smov [#allocation2]  }
  0x1f   : > { %p674_p6 = scmp.ne.s32.totalorder %s861_s29, %s673_s15  ;;  %s678_s18 = sshll.u32 %s774_s17, 4  ;;  %s679_s18 = int_to_ptr.vmem [resolvable:$false] %s678_s18 }
  0x20   : > { %s680_s19 = scalar_lea.vmem %s679_s18, 1024  ;;  %p681_p12 = scmp.lt.s32.totalorder %s861_s29, %s679_s18 }
  0x21   : > { %p676_p8 = pnand %p674_p6, %p660_p11  ;;  %p682_p0 = scmp.lt.s32.totalorder %s680_s19, %s673_s15 }
  0x23   : > { %p677_p10 = pneg %p676_p8  ;;  %p683_p1 = por %p682_p0, %p681_p12 }
  0x25   : > { %p684_p2 = pnand %p683_p1, %p677_p10 }
  0x27   : > { %687 = shalt.err (!%p684_p2)
}
  0x28   : > { %s775_s23 = smov 128   ;;  %s776_s24 = smov 8  }
  0x29   : > { %592 = dma.hbm_to_vmem [thread:$0]  (!%p857_p9), %s853_s27, 512, %s861_s29, %s144_s3, %s775_s23, %s775_s23, %s776_s24  }
  0x2a   : > { %p571_p13 = scmp.ge.s32.totalorder %s772_s14, 1  ;;  %p184_p3 = scmp.lt.s32.totalorder %s772_s14, 3 }
  0x2b   : > { %s569_s25 = sshll.u32 %s846_s22, 3  ;;  %s570_s28 = sshll.u32 %s768_s13, 7 }
  0x2c   : > { %p894_p4 = pnand %p571_p13, %p184_p3  ;;  %s170_s4 = scalar_lea.vmem [#allocation4], %s569_s25 }
  0x2d   : > { %s179_s5 = sshll.u32 %s170_s4, 4  ;;  %s902_s8 = scalar_lea.hbm %s1012_s1, %s570_s28  ;;  %s180_s5 = int_to_ptr.vmem [resolvable:$true] %s179_s5 }
  0x2e   : > { %s1018_s26 = scalar_select %p894_p4, 1, 0 }
  0x2f   : > { %s167_s27 = scalar_lea.sflag [#allocation5], %s846_s22  ;;  %s688_s29 = scalar_lea.hbm %s902_s8, 128 }
  0x30   : > { %p689_p5 = scmp.ne.s32.totalorder %s902_s8, %s688_s29  ;;  %s693_s15 = scalar_lea.hbm %s1012_s1, 256 }
  0x31   : > { %p694_p10 = scmp.lt.u32.totalorder %s902_s8, %s1012_s1  ;;  %p695_p12 = scmp.lt.u32.totalorder %s693_s15, %s688_s29 }
  0x32   : > { %p691_p6 = pnand %p689_p5, %p660_p11  ;;  %p697_p1 = scmp.lt.u32.totalorder %s688_s29, %s902_s8 }
  0x33   : > { %p696_p0 = por %p695_p12, %p694_p10 }
  0x34   : > { %p692_p8 = pneg %p691_p6 }
  0x35   : > { %p698_p2 = por %p697_p1, %p696_p0 }
  0x37   : > { %p699_p13 = pnand %p698_p2, %p692_p8 }
  0x39   : > { %702 = shalt.err (!%p699_p13)
}
  0x3a   : > { %s703_s22 = scalar_lea.vmem %s180_s5, 128  ;;  %s777_s19 = smov [#allocation4]  }
  0x3b   : > { %p704_p3 = scmp.ne.s32.totalorder %s180_s5, %s703_s22  ;;  %s708_s23 = sshll.u32 %s777_s19, 4  ;;  %s709_s23 = int_to_ptr.vmem [resolvable:$false] %s708_s23 }
  0x3c   : > { %s710_s24 = scalar_lea.vmem %s709_s23, 256  ;;  %p711_p7 = scmp.lt.s32.totalorder %s180_s5, %s709_s23 }
  0x3d   : > { %p706_p5 = pnand %p704_p3, %p660_p11  ;;  %p712_p4 = scmp.lt.s32.totalorder %s710_s24, %s703_s22 }
  0x3f   : > { %p707_p6 = pneg %p706_p5  ;;  %p713_p10 = por %p712_p4, %p711_p7 }
  0x41   : > { %p714_p12 = pnand %p713_p10, %p707_p6 }
  0x43   : > { %717 = shalt.err (!%p714_p12)
}
  0x44   : > { %595 = dma.hbm_to_vmem [thread:$0]  (!%p857_p9), %s902_s8, 128, %s180_s5, %s167_s27  }
  0x45   : > { %p1019_p8 = scmp.ne.s32.totalorder %s1018_s26, 0 }
  0x46   : > { %s190_s25 = sand.u32 (!%p1019_p8), 1, %s756_s10   ;;  %p1020_p11 = scmp.ne.s32.totalorder (!%p1019_p8), %s1016_s20, 0 }
  0x47   : > { %188 = sbr.rel (%p1019_p8) target bundleno = 152 (0x98), region = 28  ;;  %s572_s28 = sshll.u32 (!%p1019_p8), %s190_s25, 5 }
  0x48   : > { %s191_s4 = scalar_lea.sflag (!%p1019_p8), [#allocation3], %s190_s25  ;;  %s194_s6 = scalar_lea.vmem (!%p1019_p8), [#allocation2], %s572_s28 }
  0x4e   : > { %743 = dma.done.wait (%p1020_p11), %s191_s4, 512  }
  0x4f   : > { %745 = vsyncadd (%p1020_p11), %s191_s4, 4294966784  ;;  %s573_s7 = sshll.u32 %s190_s25, 3  ;;  %s200_s29 = scalar_lea.sflag [#allocation5], %s190_s25 }
  0x50   : > { %s203_s30 = scalar_lea.vmem [#allocation4], %s573_s7 }
  0x51   : > { %747 = dma.done.wait (%p1020_p11), %s200_s29, 128  }
  0x52   : > { %749 = vsyncadd (%p1020_p11), %s200_s29, 4294967168  ;;  %p235_p7 = scmp.lt.s32.totalorder %s764_s12, 1  ;;  %v259_v0 = vlaneseq  ;;  %v778_v4 = vmov 0.0   ;;  %v255_v6 = vld [vmem:[%s194_s6] sm:$0xff]  ;;  %v256_v7 = vld [vmem:[%s194_s6 + $0x8] sm:$0xff] }
  0x53   : > { %v257_v8 = vld [vmem:[%s194_s6 + $0x10] sm:$0xff]  ;;  %v258_v9 = vld [vmem:[%s194_s6 + $0x18] sm:$0xff]  ;;  %v298_v10 = vld [vmem:[%s203_s30] sm:$0xff] }
  0x54   : > { %s1029_s12 = smov (!%p235_p7, %s764_s12), 1  ;;  %v260_v1 = vshrl.u32 %v259_v0, 7  ;;  %v262_v2 = vand.u32 127, %v259_v0  ;;  %vm300_vm1 = vcmp.eq.s32.totalorder %v298_v10, 0  ;;  %vm334_vm2 = vcmp.eq.s32.totalorder %v298_v10, 1 }
  0x55   : > { %s584_s26 = sshll.u32 %s1029_s12, 4  ;;  %v577_v18 = vsel %vm300_vm1, 1.0, %v778_v4  ;;  %v578_v19 = vsel %vm334_vm2, 1.0, %v778_v4  ;;  %vm368_vm3 = vcmp.eq.s32.totalorder %v298_v10, 2  ;;  %vm402_vm4 = vcmp.eq.s32.totalorder %v298_v10, 3 }
  0x56   : > { %v266_v3 = vmul.u32 128, %v260_v1  ;;  %s940_s27 = scalar_lea.vmem %s1013_s2, %s584_s26  ;;  %v579_v22 = vsel %vm368_vm3, 1.0, %v778_v4  ;;  %v580_v34 = vsel %vm402_vm4, 1.0, %v778_v4 }
  0x57   : > { %249 = vst [vmem:[%s940_s27] sm:$0xff] %v778_v4  ;;  %250 = vst [vmem:[%s940_s27 + $0x8] sm:$0xf] %v778_v4 }
  0x58   : > { %v267_v5 = vadd.s32 %v266_v3, %v262_v2 }
  0x5a   : > { %vm268_vm0 = vcmp.lt.s32.totalorder %v267_v5, 256 }
  0x5b   : > { %v944_v11 = vsel %vm268_vm0, 1.0, %v778_v4  ;;  %v271_v12 = vsel %vm268_vm0, %v255_v6, 0.0  ;;  %v272_v13 = vsel %vm268_vm0, %v256_v7, 0.0  ;;  %v273_v14 = vsel %vm268_vm0, %v257_v8, 0.0 }
  0x5c   : > { %v274_v15 = vsel %vm268_vm0, %v258_v9, 0.0  ;;  %v275_v16 = vmax.f32 %v271_v12, %v272_v13  ;;  %v947_v20 = vmul.f32 %v577_v18, %v944_v11  ;;  %v950_v21 = vmul.f32 %v578_v19, %v944_v11 }
  0x5d   : > { %v276_v17 = vmax.f32 %v273_v14, %v274_v15  ;;  %v955_v26 = vmul.f32 %v579_v22, %v944_v11  ;;  %v405_v38 = vmul.f32 %v580_v34, %v944_v11 }
  0x5e   : > { %v315_v24 = vrot.slane %v947_v20, 4  ;;  %v349_v25 = vrot.slane %v950_v21, 4  ;;  %v314_v51 = vld [vmem:[%s940_s27 + $0x4] sm:$0x1]  ;;  %v348_v52 = vld [vmem:[%s940_s27 + $0x5] sm:$0x1] }
  0x5f   : > { %v277_v23 = vmax.f32 %v275_v16, %v276_v17  ;;  %v383_v33 = vrot.slane %v955_v26, 4  ;;  %v417_v43 = vrot.slane %v405_v38, 4  ;;  %v382_v57 = vld [vmem:[%s940_s27 + $0x6] sm:$0x1]  ;;  %v416_v0 = vld [vmem:[%s940_s27 + $0x7] sm:$0x1] }
  0x60   : > { %v316_v31 = vadd.f32 %v315_v24, %v947_v20  ;;  %v350_v32 = vadd.f32 %v349_v25, %v950_v21 }
  0x61   : > { %v278_v27 = vsub.f32 %v271_v12, %v277_v23  ;;  %v279_v28 = vsub.f32 %v272_v13, %v277_v23  ;;  %v280_v29 = vsub.f32 %v273_v14, %v277_v23  ;;  %v281_v30 = vsub.f32 %v274_v15, %v277_v23 }
  0x62   : > { %v317_v40 = vrot.slane %v316_v31, 2  ;;  %v351_v41 = vrot.slane %v350_v32, 2  ;;  %v384_v42 = vadd.f32 %v383_v33, %v955_v26  ;;  %v418_v47 = vadd.f32 %v417_v43, %v405_v38 }
  0x63   : > { %v282_v35 = vmul.f32 1.442695, %v278_v27  ;;  %v284_v36 = vmul.f32 1.442695, %v279_v28  ;;  %v286_v37 = vmul.f32 1.442695, %v280_v29 }
  0x64   : > { %v288_v39 = vmul.f32 1.442695, %v281_v30  ;;  %v318_v44 = vadd.f32 %v317_v40, %v316_v31  ;;  %v352_v45 = vadd.f32 %v351_v41, %v350_v32  ;;  %v385_v46 = vrot.slane %v384_v42, 2 }
  0x65   : > { %648 = vpow2.f32 %v282_v35  ;;  %v419_v53 = vrot.slane %v418_v47, 2 }
  0x66   : > { %650 = vpow2.f32 %v284_v36  ;;  %v319_v48 = vrot.slane %v318_v44, 1  ;;  %v353_v49 = vrot.slane %v352_v45, 1  ;;  %v386_v50 = vadd.f32 %v385_v46, %v384_v42 }
  0x67   : > { %652 = vpow2.f32 %v286_v37  ;;  %v420_v58 = vadd.f32 %v419_v53, %v418_v47 }
  0x68   : > { %654 = vpow2.f32 %v288_v39  ;;  %v320_v54 = vadd.f32 %v319_v48, %v318_v44  ;;  %v354_v55 = vadd.f32 %v353_v49, %v352_v45  ;;  %v387_v56 = vrot.slane %v386_v50, 1 }
  0x69   : > { %v421_v62 = vrot.slane %v420_v58, 1 }
  0x6a   : > { %v321_v59 = vadd.f32 %v320_v54, %v314_v51  ;;  %v355_v60 = vadd.f32 %v354_v55, %v348_v52  ;;  %v388_v61 = vadd.f32 %v387_v56, %v386_v50 }
  0x6b   : > { %v422_v2 = vadd.f32 %v421_v62, %v420_v58 }
  0x6c   : > { %322 = vst [vmem:[%s940_s27 + $0x4] sm:$0x1] %v321_v59  ;;  %356 = vst [vmem:[%s940_s27 + $0x5] sm:$0x1] %v355_v60  ;;  %v389_v63 = vadd.f32 %v388_v61, %v382_v57  ;;  %v305_v59 = vld [vmem:[%s940_s27] sm:$0x1] }
  0x6d   : > { %v423_v6 = vadd.f32 %v422_v2, %v416_v0  ;;  %v339_v60 = vld [vmem:[%s940_s27 + $0x1] sm:$0x1] }
  0x6e   : > { %390 = vst [vmem:[%s940_s27 + $0x6] sm:$0x1] %v389_v63 }
  0x6f   : > { %v649_v1 = vpop.eup %648  ;;  %424 = vst [vmem:[%s940_s27 + $0x7] sm:$0x1] %v423_v6  ;;  %v407_v6 = vld [vmem:[%s940_s27 + $0x3] sm:$0x1] }
  0x70   : > { %v651_v3 = vpop.eup %650 }
  0x71   : > { %v653_v4 = vpop.eup %652  ;;  %v290_v5 = vadd.f32 %v651_v3, %v649_v1 }
  0x72   : > { %v655_v7 = vpop.eup %654 }
  0x73   : > { %v291_v8 = vadd.f32 %v653_v4, %v290_v5  ;;  %v373_v5 = vld [vmem:[%s940_s27 + $0x2] sm:$0x1] }
  0x75   : > { %v292_v9 = vadd.f32 %v655_v7, %v291_v8  ;;  %v359_v8 = vld [vmem:[%s940_s27 + $0x9] sm:$0x1] }
  0x77   : > { %656 = vrcp.f32 %v292_v9 }
  0x81   : > { %v657_v10 = vpop.eup %656 }
  0x82   : > { %v294_v12 = vmul.f32 %v657_v10, %v649_v1  ;;  %v295_v13 = vmul.f32 %v657_v10, %v651_v3  ;;  %v296_v14 = vmul.f32 %v657_v10, %v653_v4  ;;  %v297_v15 = vmul.f32 %v657_v10, %v655_v7  ;;  %v325_v7 = vld [vmem:[%s940_s27 + $0x8] sm:$0x1] }
  0x84   : > { %v304_v16 = vmul.f32 %v947_v20, %v294_v12  ;;  %v323_v17 = vmul.f32 %v294_v12, %v294_v12  ;;  %v338_v18 = vmul.f32 %v950_v21, %v295_v13  ;;  %v357_v19 = vmul.f32 %v295_v13, %v295_v13 }
  0x85   : > { %v372_v22 = vmul.f32 %v955_v26, %v296_v14  ;;  %v391_v23 = vmul.f32 %v296_v14, %v296_v14  ;;  %v406_v24 = vmul.f32 %v405_v38, %v297_v15  ;;  %v425_v25 = vmul.f32 %v297_v15, %v297_v15 }
  0x86   : > { %v306_v27 = vrot.slane %v304_v16, 4  ;;  %v324_v28 = vmul.f32 %v944_v11, %v323_v17  ;;  %v340_v29 = vrot.slane %v338_v18, 4  ;;  %v358_v30 = vmul.f32 %v944_v11, %v357_v19  ;;  %v427_v19 = vld [vmem:[%s940_s27 + $0xb] sm:$0x1] }
  0x87   : > { %v374_v31 = vrot.slane %v372_v22, 4  ;;  %v392_v32 = vmul.f32 %v944_v11, %v391_v23  ;;  %v408_v33 = vrot.slane %v406_v24, 4  ;;  %v426_v20 = vmul.f32 %v944_v11, %v425_v25 }
  0x88   : > { %v307_v34 = vadd.f32 %v306_v27, %v304_v16  ;;  %v326_v21 = vrot.slane %v324_v28, 4  ;;  %v341_v35 = vadd.f32 %v340_v29, %v338_v18  ;;  %v360_v36 = vrot.slane %v358_v30, 4  ;;  %v393_v18 = vld [vmem:[%s940_s27 + $0xa] sm:$0x1] }
  0x89   : > { %v375_v26 = vadd.f32 %v374_v31, %v372_v22  ;;  %v394_v37 = vrot.slane %v392_v32, 4  ;;  %v409_v38 = vadd.f32 %v408_v33, %v406_v24  ;;  %v428_v39 = vrot.slane %v426_v20, 4 }
  0x8a   : > { %v308_v40 = vrot.slane %v307_v34, 2  ;;  %v327_v41 = vadd.f32 %v326_v21, %v324_v28  ;;  %v342_v42 = vrot.slane %v341_v35, 2  ;;  %v361_v43 = vadd.f32 %v360_v36, %v358_v30 }
  0x8b   : > { %v376_v44 = vrot.slane %v375_v26, 2  ;;  %v395_v45 = vadd.f32 %v394_v37, %v392_v32  ;;  %v410_v46 = vrot.slane %v409_v38, 2  ;;  %v429_v47 = vadd.f32 %v428_v39, %v426_v20 }
  0x8c   : > { %v309_v48 = vadd.f32 %v308_v40, %v307_v34  ;;  %v328_v11 = vrot.slane %v327_v41, 2  ;;  %v343_v49 = vadd.f32 %v342_v42, %v341_v35  ;;  %v362_v50 = vrot.slane %v361_v43, 2 }
  0x8d   : > { %v377_v51 = vadd.f32 %v376_v44, %v375_v26  ;;  %v396_v52 = vrot.slane %v395_v45, 2  ;;  %v411_v53 = vadd.f32 %v410_v46, %v409_v38  ;;  %v430_v54 = vrot.slane %v429_v47, 2 }
  0x8e   : > { %v310_v55 = vrot.slane %v309_v48, 1  ;;  %v329_v56 = vadd.f32 %v328_v11, %v327_v41  ;;  %v344_v57 = vrot.slane %v343_v49, 1  ;;  %v363_v58 = vadd.f32 %v362_v50, %v361_v43 }
  0x8f   : > { %v378_v61 = vrot.slane %v377_v51, 1  ;;  %v397_v62 = vadd.f32 %v396_v52, %v395_v45  ;;  %v412_v63 = vrot.slane %v411_v53, 1  ;;  %v431_v0 = vadd.f32 %v430_v54, %v429_v47 }
  0x90   : > { %v311_v1 = vadd.f32 %v310_v55, %v309_v48  ;;  %v330_v2 = vrot.slane %v329_v56, 1  ;;  %v345_v3 = vadd.f32 %v344_v57, %v343_v49  ;;  %v364_v4 = vrot.slane %v363_v58, 1 }
  0x91   : > { %v379_v9 = vadd.f32 %v378_v61, %v377_v51  ;;  %v398_v10 = vrot.slane %v397_v62, 1  ;;  %v413_v12 = vadd.f32 %v412_v63, %v411_v53  ;;  %v432_v13 = vrot.slane %v431_v0, 1 }
  0x92   : > { %v312_v14 = vadd.f32 %v311_v1, %v305_v59  ;;  %v331_v15 = vadd.f32 %v330_v2, %v329_v56  ;;  %v346_v16 = vadd.f32 %v345_v3, %v339_v60  ;;  %v365_v17 = vadd.f32 %v364_v4, %v363_v58 }
  0x93   : > { %v380_v22 = vadd.f32 %v379_v9, %v373_v5  ;;  %v399_v23 = vadd.f32 %v398_v10, %v397_v62  ;;  %v414_v24 = vadd.f32 %v413_v12, %v407_v6  ;;  %v433_v25 = vadd.f32 %v432_v13, %v431_v0 }
  0x94   : > { %313 = vst [vmem:[%s940_s27] sm:$0x1] %v312_v14  ;;  %v332_v27 = vadd.f32 %v331_v15, %v325_v7  ;;  %347 = vst [vmem:[%s940_s27 + $0x1] sm:$0x1] %v346_v16  ;;  %v366_v28 = vadd.f32 %v365_v17, %v359_v8 }
  0x95   : > { %381 = vst [vmem:[%s940_s27 + $0x2] sm:$0x1] %v380_v22  ;;  %v400_v29 = vadd.f32 %v399_v23, %v393_v18  ;;  %415 = vst [vmem:[%s940_s27 + $0x3] sm:$0x1] %v414_v24  ;;  %v434_v30 = vadd.f32 %v433_v25, %v427_v19 }
  0x96   : > { %333 = vst [vmem:[%s940_s27 + $0x8] sm:$0x1] %v332_v27  ;;  %367 = vst [vmem:[%s940_s27 + $0x9] sm:$0x1] %v366_v28 }
  0x97   : > { %401 = vst [vmem:[%s940_s27 + $0xa] sm:$0x1] %v400_v29  ;;  %435 = vst [vmem:[%s940_s27 + $0xb] sm:$0x1] %v434_v30 }
  0x98 PF: > { %s18_s14 = sadd.s32 1, %s772_s14   ;;  %s1021_s9 = smov %s756_s10 }
  0x99   : > { %p15_p9 = scmp.ge.s32.totalorder %s18_s14, 4   ;;  %s1022_s10 = smov %s760_s11 }
  0x9a   : > { %s1023_s11 = smov %s843_s21  ;;  %s1024_s12 = smov %s768_s13 }
  0x9b   : > { %s1025_s13 = smov %s1027_s16  ;;  %17 = sbr.rel (!%p15_p9) target bundleno = 6 (0x6), region = 89 }
  0xa2   :  { %465 = vsyncpa [#allocation3], 1 }
  0xa3   :  { %467 = vsyncpa [#allocation3 + $0x1], 1 }
  0xa4   :  { %468 = vsyncpa [#allocation5], 1 }
  0xa5   :  { %470 = vsyncpa [#allocation5 + $0x1], 1 }

</bundles_post_ra>
